<compile_context>
chip_gen: v5e
topology: v5e:2x2
jax: 0.10.0
libtpu: 0.0.40
codegen_flags: <defaults>
</compile_context>

<pallas_src>
import jax
import jax.numpy as jnp
from jax.experimental import pallas as pl
from jax.experimental.pallas import tpu as pltpu


def _round_up(x, m):
    return (x + m - 1) // m * m


# --------------------------- parameter preparation ---------------------------

def prepare_temporal_dense_params(stage_params, indim, outdim,
                                  *, compute_dtype=jnp.bfloat16):
    """One-time packing of Conv1d weights + folded BN affine (hoisted).

    stage_params: list of (w, bn_scale, bn_bias); w is the PyTorch Conv1d
        weight (C_out, C_in, 3); scale/bias are folded eval-mode BatchNorm1d.
    Returns kernel-ready packed parameters.
    """
    num_stages = len(stage_params)          # num_convs dense stages + outconv
    num_convs = num_stages - 1
    c_total = indim + num_convs * outdim
    CP = max(128, _round_up(c_total, 128))  # padded channel slab (lane dim)

    # Per-(stage, tap) full-width weight matrices: rows = source channels in
    # the packed slab (zero beyond the stage's C_in), cols = destination
    # channels in the slab (dense stages) or [0, outdim) (outconv).
    w_all = jnp.zeros((num_stages * 3, CP, CP), jnp.float32)
    s_all = jnp.ones((num_stages, 1, CP), jnp.float32)    # scale=1 elsewhere
    b_all = jnp.zeros((num_stages, 1, CP), jnp.float32)   # bias=0 elsewhere

    for s, (w, scale, bias) in enumerate(stage_params):
        c_out, c_in, _ = w.shape
        assert c_out == outdim
        dst = indim + s * outdim if s < num_convs else 0
        for tap in range(3):                # tap k pairs with input time t+k-1
            w_tap = jnp.transpose(w[:, :, tap])            # (c_in, outdim)
            w_all = w_all.at[s * 3 + tap, :c_in, dst:dst + outdim].set(w_tap)
        s_all = s_all.at[s, 0, dst:dst + outdim].set(scale.astype(jnp.float32))
        b_all = b_all.at[s, 0, dst:dst + outdim].set(bias.astype(jnp.float32))

    return dict(w_all=w_all.astype(compute_dtype), s_all=s_all, b_all=b_all,
                indim=indim, outdim=outdim, num_stages=num_stages,
                CP=CP, compute_dtype=compute_dtype)


# --------------------------------- kernel ------------------------------------

def _make_fused_kernel(T, outdim, num_stages):
    def kernel(x_ref, w_ref, s_ref, b_ref, o_ref, buf_ref):
        # x_ref  : (1, T, CP)  input features (channels zero-padded to CP)
        # w_ref  : (num_stages*3, CP, CP)  per-(stage,tap) weights
        # s_ref  : (num_stages, 1, CP)  folded BN scale (1 outside dest slot)
        # b_ref  : (num_stages, 1, CP)  folded BN bias  (0 outside dest slot)
        # o_ref  : (1, T, outdim) final stage output
        # buf_ref: (TP, CP) VMEM feature slab (compute dtype)
        cdt = buf_ref.dtype
        buf_ref[pl.ds(0, T), :] = x_ref[0]          # rows 0..T-1 = times 0..T-1

        for s in range(num_stages):                 # static unroll (small)
            h = buf_ref[pl.ds(0, T), :]                              # (T, CP)
            # Replicate-padded +-1 temporal taps, built in-registers.
            h_prev = jnp.concatenate([h[:1], h[:-1]], axis=0)        # t-1
            h_next = jnp.concatenate([h[1:], h[-1:]], axis=0)        # t+1
            acc = jnp.dot(h_prev, w_ref[s * 3 + 0],
                          preferred_element_type=jnp.float32)
            acc = acc + jnp.dot(h, w_ref[s * 3 + 1],
                                preferred_element_type=jnp.float32)
            acc = acc + jnp.dot(h_next, w_ref[s * 3 + 2],
                                preferred_element_type=jnp.float32)
            y = jnp.maximum(acc * s_ref[s] + b_ref[s], 0.0)   # f32 epilogue
            if s < num_stages - 1:
                # Dense concat: y is exactly zero outside this stage's
                # destination columns and the buffer is zero inside them,
                # so a plain add places the new block (no masked stores).
                buf_ref[pl.ds(0, T), :] = h + y.astype(cdt)
            else:
                o_ref[0] = y[:, :outdim].astype(o_ref.dtype)
    return kernel


# --------------------------------- wrapper ------------------------------------

def temporal_dense_conv_layer2_forward(x, params):
    """Forward of TemporalDenseConvLayer2.  x: (B, indim, T) NCL layout."""
    w_all, s_all, b_all = params["w_all"], params["s_all"], params["b_all"]
    indim, outdim = params["indim"], params["outdim"]
    num_stages, CP = params["num_stages"], params["CP"]
    cdt = params["compute_dtype"]

    B, c_in, T = x.shape
    assert c_in == indim
    TP = _round_up(T, 16)   # bf16 packs 2 rows/sublane -> 16-row alignment

    # Single boundary layout op: NCL -> NLC, zero-pad channels to the CP lane
    # slab, cast to compute dtype (XLA fuses these into one tiny pass).
    x_cl = jnp.transpose(x, (0, 2, 1))
    x_cl = jnp.pad(x_cl, ((0, 0), (0, 0), (0, CP - indim))).astype(cdt)

    out = pl.pallas_call(
        _make_fused_kernel(T, outdim, num_stages),
        out_shape=jax.ShapeDtypeStruct((B, T, outdim), jnp.float32),
        grid_spec=pltpu.PrefetchScalarGridSpec(
            num_scalar_prefetch=0,
            grid=(B,),
            in_specs=[
                pl.BlockSpec((1, T, CP), lambda b: (b, 0, 0)),
                # Weights / BN params: index maps independent of b, so they
                # stay VMEM-resident across the batch loop.
                pl.BlockSpec((num_stages * 3, CP, CP), lambda b: (0, 0, 0)),
                pl.BlockSpec((num_stages, 1, CP), lambda b: (0, 0, 0)),
                pl.BlockSpec((num_stages, 1, CP), lambda b: (0, 0, 0)),
            ],
            out_specs=pl.BlockSpec((1, T, outdim), lambda b: (b, 0, 0)),
            scratch_shapes=[pltpu.VMEM((TP, CP), cdt)],
        ),
        compiler_params=pltpu.CompilerParams(
            dimension_semantics=("parallel",)),
    )(x_cl, w_all, s_all, b_all)

    return jnp.transpose(out, (0, 2, 1))        # back to PyTorch NCL layout


# ----------------------- plain-JAX reference (for checking) ------------------

def _ref_stage(x, w, scale, bias):
    # x: (B, C_in, T)
    x_pad = jnp.pad(x, ((0, 0), (0, 0), (1, 1)), mode="edge")
    y = jax.lax.conv_general_dilated(
        x_pad, w, window_strides=(1,), padding="VALID",
        dimension_numbers=("NCH", "OIH", "NCH"),
        precision=jax.lax.Precision.HIGHEST)
    y = y * scale[None, :, None] + bias[None, :, None]
    return jnp.maximum(y, 0.0)


def _ref_forward(x, stage_params):
    for (w, s, b) in stage_params[:-1]:
        x1 = _ref_stage(x, w, s, b)
        x = jnp.concatenate([x, x1], axis=1)
    w, s, b = stage_params[-1]
    return _ref_stage(x, w, s, b)


if __name__ == "__main__":
    key = jax.random.PRNGKey(0)

    B, indim, outdim, T, num_convs = 2, 16, 24, 33, 2
    eps = 1e-5

    in_channels = ([indim + i * outdim for i in range(num_convs)]
                   + [indim + num_convs * outdim])

    stage_params = []
    for c_in in in_channels:
        key, kw, kg, kb, km, kv = jax.random.split(key, 6)
        bound = 1.0 / jnp.sqrt(jnp.float32(c_in * 3))
        w = jax.random.uniform(kw, (outdim, c_in, 3), jnp.float32, -bound, bound)
        gamma = jax.random.uniform(kg, (outdim,), jnp.float32, 0.5, 1.5)
        beta = 0.1 * jax.random.normal(kb, (outdim,), jnp.float32)
        rmean = 0.1 * jax.random.normal(km, (outdim,), jnp.float32)
        rvar = jax.random.uniform(kv, (outdim,), jnp.float32, 0.5, 1.5)
        scale = gamma / jnp.sqrt(rvar + eps)          # folded BN (eval mode)
        bias = beta - rmean * scale
        stage_params.append((w, scale, bias))

    key, kx = jax.random.split(key)
    x = jax.random.normal(kx, (B, indim, T), jnp.float32)

    ref = _ref_forward(x, stage_params)

    # Strict validation path: f32 matmul inputs.
    params_f32 = prepare_temporal_dense_params(stage_params, indim, outdim,
                                               compute_dtype=jnp.float32)
    out_f32 = temporal_dense_conv_layer2_forward(x, params_f32)
    jax.block_until_ready(out_f32)
    assert out_f32.shape == (B, outdim, T), out_f32.shape
    err_f32 = float(jnp.max(jnp.abs(out_f32 - ref)))
    assert jnp.allclose(out_f32, ref, atol=2e-4, rtol=2e-4), err_f32

    # Performance-default path: bf16 matmul inputs, f32 accumulation/epilogue.
    params_bf16 = prepare_temporal_dense_params(stage_params, indim, outdim,
                                                compute_dtype=jnp.bfloat16)
    out_bf16 = temporal_dense_conv_layer2_forward(x, params_bf16)
    jax.block_until_ready(out_bf16)
    assert out_bf16.shape == (B, outdim, T), out_bf16.shape
    err_bf16 = float(jnp.max(jnp.abs(out_bf16 - ref)))
    assert jnp.allclose(out_bf16, ref, atol=6e-2, rtol=6e-2), err_bf16

    print("KERNEL_OK")
</pallas_src>

<mosaic_0001>
module attributes {stable_mosaic.version = 11 : i64} {
  func.func @kernel(%arg0: i32, %arg1: memref<1x33x128xf32, #tpu.memory_space<vmem>>, %arg2: memref<9x128x128xf32, #tpu.memory_space<vmem>>, %arg3: memref<3x1x128xf32, #tpu.memory_space<vmem>>, %arg4: memref<3x1x128xf32, #tpu.memory_space<vmem>>, %arg5: memref<1x33x24xf32, #tpu.memory_space<vmem>>, %arg6: memref<48x128xf32, #tpu.memory_space<vmem>>) attributes {dimension_semantics = [#tpu.dimension_semantics<parallel>], iteration_bounds = array<i64: 2>, scalar_prefetch = 0 : i64, scratch_operands = 1 : i64, tpu.core_type = #tpu.core_type<tc>, window_params = [{transform_indices = @transform_0, window_bounds = array<i64: 1, 33, 128>}, {pipeline_mode = #tpu.pipeline_mode<synchronous>, transform_indices = @transform_1, window_bounds = array<i64: 9, 128, 128>}, {pipeline_mode = #tpu.pipeline_mode<synchronous>, transform_indices = @transform_2, window_bounds = array<i64: 3, 1, 128>}, {pipeline_mode = #tpu.pipeline_mode<synchronous>, transform_indices = @transform_3, window_bounds = array<i64: 3, 1, 128>}, {transform_indices = @transform_4, window_bounds = array<i64: 1, 33, 24>}]} {
    %c0 = arith.constant 0 : index
    %c0_0 = arith.constant 0 : index
    %c0_1 = arith.constant 0 : index
    %0 = vector.load %arg1[%c0, %c0_0, %c0_1] : memref<1x33x128xf32, #tpu.memory_space<vmem>>, vector<1x33x128xf32>
    %1 = vector.shape_cast %0 : vector<1x33x128xf32> to vector<33x128xf32>
    %c0_2 = arith.constant 0 : index
    %c0_3 = arith.constant 0 : index
    %2 = vector.load %arg6[%c0_2, %c0_3] : memref<48x128xf32, #tpu.memory_space<vmem>>, vector<33x128xf32>
    tpu.vector_store %arg6[%c0_2, %c0_3], %1 {strides = array<i32>} : memref<48x128xf32, #tpu.memory_space<vmem>>, vector<33x128xf32>,
    %c0_4 = arith.constant 0 : index
    %c0_5 = arith.constant 0 : index
    %3 = vector.load %arg6[%c0_4, %c0_5] : memref<48x128xf32, #tpu.memory_space<vmem>>, vector<33x128xf32>
    %4 = vector.extract_strided_slice %3 {offsets = [0, 0], sizes = [1, 128], strides = [1, 1]} : vector<33x128xf32> to vector<1x128xf32>
    %5 = vector.extract_strided_slice %3 {offsets = [0, 0], sizes = [32, 128], strides = [1, 1]} : vector<33x128xf32> to vector<32x128xf32>
    %6 = tpu.concatenate %4, %5 in 0 : vector<1x128xf32>, vector<32x128xf32> -> vector<33x128xf32>
    %7 = vector.extract_strided_slice %3 {offsets = [1, 0], sizes = [32, 128], strides = [1, 1]} : vector<33x128xf32> to vector<32x128xf32>
    %8 = vector.extract_strided_slice %3 {offsets = [32, 0], sizes = [1, 128], strides = [1, 1]} : vector<33x128xf32> to vector<1x128xf32>
    %9 = tpu.concatenate %7, %8 in 0 : vector<32x128xf32>, vector<1x128xf32> -> vector<33x128xf32>
    %c0_6 = arith.constant 0 : index
    %c0_7 = arith.constant 0 : index
    %c0_8 = arith.constant 0 : index
    %10 = vector.load %arg2[%c0_6, %c0_7, %c0_8] : memref<9x128x128xf32, #tpu.memory_space<vmem>>, vector<1x128x128xf32>
    %11 = vector.shape_cast %10 : vector<1x128x128xf32> to vector<128x128xf32>
    %cst = arith.constant dense<0.000000e+00> : vector<33x128xf32>
    %12 = tpu.matmul %6, %11, %cst {dimension_numbers = #tpu.dot_dimension_numbers<[1], [0], [0], [1], [0, 0, 1, 1], [], []>} : vector<33x128xf32>, vector<128x128xf32>, vector<33x128xf32> -> vector<33x128xf32>
    %c1 = arith.constant 1 : index
    %c0_9 = arith.constant 0 : index
    %c0_10 = arith.constant 0 : index
    %13 = vector.load %arg2[%c1, %c0_9, %c0_10] : memref<9x128x128xf32, #tpu.memory_space<vmem>>, vector<1x128x128xf32>
    %14 = vector.shape_cast %13 : vector<1x128x128xf32> to vector<128x128xf32>
    %cst_11 = arith.constant dense<0.000000e+00> : vector<33x128xf32>
    %15 = tpu.matmul %3, %14, %cst_11 {dimension_numbers = #tpu.dot_dimension_numbers<[1], [0], [0], [1], [0, 0, 1, 1], [], []>} : vector<33x128xf32>, vector<128x128xf32>, vector<33x128xf32> -> vector<33x128xf32>
    %16 = arith.addf %12, %15 : vector<33x128xf32>
    %c2 = arith.constant 2 : index
    %c0_12 = arith.constant 0 : index
    %c0_13 = arith.constant 0 : index
    %17 = vector.load %arg2[%c2, %c0_12, %c0_13] : memref<9x128x128xf32, #tpu.memory_space<vmem>>, vector<1x128x128xf32>
    %18 = vector.shape_cast %17 : vector<1x128x128xf32> to vector<128x128xf32>
    %cst_14 = arith.constant dense<0.000000e+00> : vector<33x128xf32>
    %19 = tpu.matmul %9, %18, %cst_14 {dimension_numbers = #tpu.dot_dimension_numbers<[1], [0], [0], [1], [0, 0, 1, 1], [], []>} : vector<33x128xf32>, vector<128x128xf32>, vector<33x128xf32> -> vector<33x128xf32>
    %20 = arith.addf %16, %19 : vector<33x128xf32>
    %c0_15 = arith.constant 0 : index
    %c0_16 = arith.constant 0 : index
    %c0_17 = arith.constant 0 : index
    %21 = vector.load %arg3[%c0_15, %c0_16, %c0_17] : memref<3x1x128xf32, #tpu.memory_space<vmem>>, vector<1x1x128xf32>
    %22 = vector.shape_cast %21 : vector<1x1x128xf32> to vector<1x128xf32>
    %23 = vector.broadcast %22 : vector<1x128xf32> to vector<33x128xf32>
    %24 = arith.mulf %20, %23 : vector<33x128xf32>
    %c0_18 = arith.constant 0 : index
    %c0_19 = arith.constant 0 : index
    %c0_20 = arith.constant 0 : index
    %25 = vector.load %arg4[%c0_18, %c0_19, %c0_20] : memref<3x1x128xf32, #tpu.memory_space<vmem>>, vector<1x1x128xf32>
    %26 = vector.shape_cast %25 : vector<1x1x128xf32> to vector<1x128xf32>
    %27 = vector.broadcast %26 : vector<1x128xf32> to vector<33x128xf32>
    %28 = arith.addf %24, %27 : vector<33x128xf32>
    %cst_21 = arith.constant 0.000000e+00 : f32
    %29 = vector.broadcast %cst_21 : f32 to vector<33x128xf32>
    %30 = arith.maximumf %28, %29 : vector<33x128xf32>
    %31 = arith.addf %3, %30 : vector<33x128xf32>
    %c0_22 = arith.constant 0 : index
    %c0_23 = arith.constant 0 : index
    %32 = vector.load %arg6[%c0_22, %c0_23] : memref<48x128xf32, #tpu.memory_space<vmem>>, vector<33x128xf32>
    tpu.vector_store %arg6[%c0_22, %c0_23], %31 {strides = array<i32>} : memref<48x128xf32, #tpu.memory_space<vmem>>, vector<33x128xf32>,
    %c0_24 = arith.constant 0 : index
    %c0_25 = arith.constant 0 : index
    %33 = vector.load %arg6[%c0_24, %c0_25] : memref<48x128xf32, #tpu.memory_space<vmem>>, vector<33x128xf32>
    %34 = vector.extract_strided_slice %33 {offsets = [0, 0], sizes = [1, 128], strides = [1, 1]} : vector<33x128xf32> to vector<1x128xf32>
    %35 = vector.extract_strided_slice %33 {offsets = [0, 0], sizes = [32, 128], strides = [1, 1]} : vector<33x128xf32> to vector<32x128xf32>
    %36 = tpu.concatenate %34, %35 in 0 : vector<1x128xf32>, vector<32x128xf32> -> vector<33x128xf32>
    %37 = vector.extract_strided_slice %33 {offsets = [1, 0], sizes = [32, 128], strides = [1, 1]} : vector<33x128xf32> to vector<32x128xf32>
    %38 = vector.extract_strided_slice %33 {offsets = [32, 0], sizes = [1, 128], strides = [1, 1]} : vector<33x128xf32> to vector<1x128xf32>
    %39 = tpu.concatenate %37, %38 in 0 : vector<32x128xf32>, vector<1x128xf32> -> vector<33x128xf32>
    %c3 = arith.constant 3 : index
    %c0_26 = arith.constant 0 : index
    %c0_27 = arith.constant 0 : index
    %40 = vector.load %arg2[%c3, %c0_26, %c0_27] : memref<9x128x128xf32, #tpu.memory_space<vmem>>, vector<1x128x128xf32>
    %41 = vector.shape_cast %40 : vector<1x128x128xf32> to vector<128x128xf32>
    %cst_28 = arith.constant dense<0.000000e+00> : vector<33x128xf32>
    %42 = tpu.matmul %36, %41, %cst_28 {dimension_numbers = #tpu.dot_dimension_numbers<[1], [0], [0], [1], [0, 0, 1, 1], [], []>} : vector<33x128xf32>, vector<128x128xf32>, vector<33x128xf32> -> vector<33x128xf32>
    %c4 = arith.constant 4 : index
    %c0_29 = arith.constant 0 : index
    %c0_30 = arith.constant 0 : index
    %43 = vector.load %arg2[%c4, %c0_29, %c0_30] : memref<9x128x128xf32, #tpu.memory_space<vmem>>, vector<1x128x128xf32>
    %44 = vector.shape_cast %43 : vector<1x128x128xf32> to vector<128x128xf32>
    %cst_31 = arith.constant dense<0.000000e+00> : vector<33x128xf32>
    %45 = tpu.matmul %33, %44, %cst_31 {dimension_numbers = #tpu.dot_dimension_numbers<[1], [0], [0], [1], [0, 0, 1, 1], [], []>} : vector<33x128xf32>, vector<128x128xf32>, vector<33x128xf32> -> vector<33x128xf32>
    %46 = arith.addf %42, %45 : vector<33x128xf32>
    %c5 = arith.constant 5 : index
    %c0_32 = arith.constant 0 : index
    %c0_33 = arith.constant 0 : index
    %47 = vector.load %arg2[%c5, %c0_32, %c0_33] : memref<9x128x128xf32, #tpu.memory_space<vmem>>, vector<1x128x128xf32>
    %48 = vector.shape_cast %47 : vector<1x128x128xf32> to vector<128x128xf32>
    %cst_34 = arith.constant dense<0.000000e+00> : vector<33x128xf32>
    %49 = tpu.matmul %39, %48, %cst_34 {dimension_numbers = #tpu.dot_dimension_numbers<[1], [0], [0], [1], [0, 0, 1, 1], [], []>} : vector<33x128xf32>, vector<128x128xf32>, vector<33x128xf32> -> vector<33x128xf32>
    %50 = arith.addf %46, %49 : vector<33x128xf32>
    %c1_35 = arith.constant 1 : index
    %c0_36 = arith.constant 0 : index
    %c0_37 = arith.constant 0 : index
    %51 = vector.load %arg3[%c1_35, %c0_36, %c0_37] : memref<3x1x128xf32, #tpu.memory_space<vmem>>, vector<1x1x128xf32>
    %52 = vector.shape_cast %51 : vector<1x1x128xf32> to vector<1x128xf32>
    %53 = vector.broadcast %52 : vector<1x128xf32> to vector<33x128xf32>
    %54 = arith.mulf %50, %53 : vector<33x128xf32>
    %c1_38 = arith.constant 1 : index
    %c0_39 = arith.constant 0 : index
    %c0_40 = arith.constant 0 : index
    %55 = vector.load %arg4[%c1_38, %c0_39, %c0_40] : memref<3x1x128xf32, #tpu.memory_space<vmem>>, vector<1x1x128xf32>
    %56 = vector.shape_cast %55 : vector<1x1x128xf32> to vector<1x128xf32>
    %57 = vector.broadcast %56 : vector<1x128xf32> to vector<33x128xf32>
    %58 = arith.addf %54, %57 : vector<33x128xf32>
    %cst_41 = arith.constant 0.000000e+00 : f32
    %59 = vector.broadcast %cst_41 : f32 to vector<33x128xf32>
    %60 = arith.maximumf %58, %59 : vector<33x128xf32>
    %61 = arith.addf %33, %60 : vector<33x128xf32>
    %c0_42 = arith.constant 0 : index
    %c0_43 = arith.constant 0 : index
    %62 = vector.load %arg6[%c0_42, %c0_43] : memref<48x128xf32, #tpu.memory_space<vmem>>, vector<33x128xf32>
    tpu.vector_store %arg6[%c0_42, %c0_43], %61 {strides = array<i32>} : memref<48x128xf32, #tpu.memory_space<vmem>>, vector<33x128xf32>,
    %c0_44 = arith.constant 0 : index
    %c0_45 = arith.constant 0 : index
    %63 = vector.load %arg6[%c0_44, %c0_45] : memref<48x128xf32, #tpu.memory_space<vmem>>, vector<33x128xf32>
    %64 = vector.extract_strided_slice %63 {offsets = [0, 0], sizes = [1, 128], strides = [1, 1]} : vector<33x128xf32> to vector<1x128xf32>
    %65 = vector.extract_strided_slice %63 {offsets = [0, 0], sizes = [32, 128], strides = [1, 1]} : vector<33x128xf32> to vector<32x128xf32>
    %66 = tpu.concatenate %64, %65 in 0 : vector<1x128xf32>, vector<32x128xf32> -> vector<33x128xf32>
    %67 = vector.extract_strided_slice %63 {offsets = [1, 0], sizes = [32, 128], strides = [1, 1]} : vector<33x128xf32> to vector<32x128xf32>
    %68 = vector.extract_strided_slice %63 {offsets = [32, 0], sizes = [1, 128], strides = [1, 1]} : vector<33x128xf32> to vector<1x128xf32>
    %69 = tpu.concatenate %67, %68 in 0 : vector<32x128xf32>, vector<1x128xf32> -> vector<33x128xf32>
    %c6 = arith.constant 6 : index
    %c0_46 = arith.constant 0 : index
    %c0_47 = arith.constant 0 : index
    %70 = vector.load %arg2[%c6, %c0_46, %c0_47] : memref<9x128x128xf32, #tpu.memory_space<vmem>>, vector<1x128x128xf32>
    %71 = vector.shape_cast %70 : vector<1x128x128xf32> to vector<128x128xf32>
    %cst_48 = arith.constant dense<0.000000e+00> : vector<33x128xf32>
    %72 = tpu.matmul %66, %71, %cst_48 {dimension_numbers = #tpu.dot_dimension_numbers<[1], [0], [0], [1], [0, 0, 1, 1], [], []>} : vector<33x128xf32>, vector<128x128xf32>, vector<33x128xf32> -> vector<33x128xf32>
    %c7 = arith.constant 7 : index
    %c0_49 = arith.constant 0 : index
    %c0_50 = arith.constant 0 : index
    %73 = vector.load %arg2[%c7, %c0_49, %c0_50] : memref<9x128x128xf32, #tpu.memory_space<vmem>>, vector<1x128x128xf32>
    %74 = vector.shape_cast %73 : vector<1x128x128xf32> to vector<128x128xf32>
    %cst_51 = arith.constant dense<0.000000e+00> : vector<33x128xf32>
    %75 = tpu.matmul %63, %74, %cst_51 {dimension_numbers = #tpu.dot_dimension_numbers<[1], [0], [0], [1], [0, 0, 1, 1], [], []>} : vector<33x128xf32>, vector<128x128xf32>, vector<33x128xf32> -> vector<33x128xf32>
    %76 = arith.addf %72, %75 : vector<33x128xf32>
    %c8 = arith.constant 8 : index
    %c0_52 = arith.constant 0 : index
    %c0_53 = arith.constant 0 : index
    %77 = vector.load %arg2[%c8, %c0_52, %c0_53] : memref<9x128x128xf32, #tpu.memory_space<vmem>>, vector<1x128x128xf32>
    %78 = vector.shape_cast %77 : vector<1x128x128xf32> to vector<128x128xf32>
    %cst_54 = arith.constant dense<0.000000e+00> : vector<33x128xf32>
    %79 = tpu.matmul %69, %78, %cst_54 {dimension_numbers = #tpu.dot_dimension_numbers<[1], [0], [0], [1], [0, 0, 1, 1], [], []>} : vector<33x128xf32>, vector<128x128xf32>, vector<33x128xf32> -> vector<33x128xf32>
    %80 = arith.addf %76, %79 : vector<33x128xf32>
    %c2_55 = arith.constant 2 : index
    %c0_56 = arith.constant 0 : index
    %c0_57 = arith.constant 0 : index
    %81 = vector.load %arg3[%c2_55, %c0_56, %c0_57] : memref<3x1x128xf32, #tpu.memory_space<vmem>>, vector<1x1x128xf32>
    %82 = vector.shape_cast %81 : vector<1x1x128xf32> to vector<1x128xf32>
    %83 = vector.broadcast %82 : vector<1x128xf32> to vector<33x128xf32>
    %84 = arith.mulf %80, %83 : vector<33x128xf32>
    %c2_58 = arith.constant 2 : index
    %c0_59 = arith.constant 0 : index
    %c0_60 = arith.constant 0 : index
    %85 = vector.load %arg4[%c2_58, %c0_59, %c0_60] : memref<3x1x128xf32, #tpu.memory_space<vmem>>, vector<1x1x128xf32>
    %86 = vector.shape_cast %85 : vector<1x1x128xf32> to vector<1x128xf32>
    %87 = vector.broadcast %86 : vector<1x128xf32> to vector<33x128xf32>
    %88 = arith.addf %84, %87 : vector<33x128xf32>
    %cst_61 = arith.constant 0.000000e+00 : f32
    %89 = vector.broadcast %cst_61 : f32 to vector<33x128xf32>
    %90 = arith.maximumf %88, %89 : vector<33x128xf32>
    %91 = vector.extract_strided_slice %90 {offsets = [0, 0], sizes = [33, 24], strides = [1, 1]} : vector<33x128xf32> to vector<33x24xf32>
    %c0_62 = arith.constant 0 : index
    %c0_63 = arith.constant 0 : index
    %c0_64 = arith.constant 0 : index
    %92 = vector.load %arg5[%c0_62, %c0_63, %c0_64] : memref<1x33x24xf32, #tpu.memory_space<vmem>>, vector<1x33x24xf32>
    %93 = vector.shape_cast %92 : vector<1x33x24xf32> to vector<33x24xf32>
    %94 = vector.shape_cast %91 : vector<33x24xf32> to vector<1x33x24xf32>
    tpu.vector_store %arg5[%c0_62, %c0_63, %c0_64], %94 {strides = array<i32>} : memref<1x33x24xf32, #tpu.memory_space<vmem>>, vector<1x33x24xf32>,
    return
  }
  func.func @transform_0(%arg0: i32) -> (i32, i32, i32) {
    %c0_i32 = arith.constant 0 : i32
    %c0_i32_0 = arith.constant 0 : i32
    %c0_i32_1 = arith.constant 0 : i32
    return %arg0, %c0_i32, %c0_i32_0 : i32, i32, i32
  }
  func.func @transform_1(%arg0: i32) -> (i32, i32, i32) {
    %c0_i32 = arith.constant 0 : i32
    %c0_i32_0 = arith.constant 0 : i32
    %c0_i32_1 = arith.constant 0 : i32
    %c0_i32_2 = arith.constant 0 : i32
    return %c0_i32, %c0_i32_0, %c0_i32_1 : i32, i32, i32
  }
  func.func @transform_2(%arg0: i32) -> (i32, i32, i32) {
    %c0_i32 = arith.constant 0 : i32
    %c0_i32_0 = arith.constant 0 : i32
    %c0_i32_1 = arith.constant 0 : i32
    %c0_i32_2 = arith.constant 0 : i32
    return %c0_i32, %c0_i32_0, %c0_i32_1 : i32, i32, i32
  }
  func.func @transform_3(%arg0: i32) -> (i32, i32, i32) {
    %c0_i32 = arith.constant 0 : i32
    %c0_i32_0 = arith.constant 0 : i32
    %c0_i32_1 = arith.constant 0 : i32
    %c0_i32_2 = arith.constant 0 : i32
    return %c0_i32, %c0_i32_0, %c0_i32_1 : i32, i32, i32
  }
  func.func @transform_4(%arg0: i32) -> (i32, i32, i32) {
    %c0_i32 = arith.constant 0 : i32
    %c0_i32_0 = arith.constant 0 : i32
    %c0_i32_1 = arith.constant 0 : i32
    return %arg0, %c0_i32, %c0_i32_0 : i32, i32, i32
  }
}

</mosaic_0001>

<bundles_post_ra>
// kernel: tpu_custom_call.1
= control target key start
LH: loop header
LB: loop body
LE: loop exit
PB: predicated region body
PF: predicated region fallthrough
CT: control target
= control target key end

     0   :  { %9 = vsyncpa [#allocation4], 0  ;;  %s1118_s15 = smov 0   ;;  %s1342_s0 = inlined_call_operand.vmem [shape: f32[2,33,128], index: 0, kind: input, shape index: {}]   ;;  %s1343_s1 = inlined_call_operand.hbm [shape: f32[9,128,128], index: 1, kind: input, shape index: {}]   ;;  %s1344_s2 = inlined_call_operand.vmem [shape: f32[3,1,128], index: 2, kind: input, shape index: {}]   ;;  %s1345_s3 = inlined_call_operand.vmem [shape: f32[3,1,128], index: 3, kind: input, shape index: {}]   ;;  %s1346_s4 = inlined_call_operand.vmem [shape: f32[2,33,24], index: 4, kind: output, shape index: {}]  }
   0x1 LB: > { %s146_s18 = sshll.u32 %s1343_s1, 4  ;;  %s1127_s19 = sadd.s32 4294967295, %s1088_s15   ;;  %s1088_s15 = sphi %s1118_s15, %s15_s15   ;;  %s147_s18 = int_to_ptr.hbm [resolvable:$true] %s146_s18 }
   0x2   : > { %p959_p0 = scmp.ge.s32.totalorder %s1088_s15, 1  ;;  %p135_p1 = scmp.lt.s32.totalorder %s1088_s15, 3 }
   0x3   : > { %p1029_p2 = scmp.eq.s32.totalorder %s1127_s19, 0  ;;  %s1090_s20 = smov [#allocation3]  }
   0x4   : > { %p136_p3 = pnand %p959_p0, %p135_p1  ;;  %s148_s21 = sshll.u32 %s1090_s20, 4  ;;  %s149_s21 = int_to_ptr.vmem [resolvable:$true] %s148_s21 }
   0x5   : > { %s1091_s22 = smov 128   ;;  %s1092_s23 = smov 8  }
   0x6   : > { %p1025_p4 = pneg %p136_p3  ;;  %178 = sbr.rel (%p136_p3) target bundleno = 538 (0x21a), region = 36 }
   0x8   : > { %p1026_p5 = pnand %p1029_p2, %p1025_p4 }
   0xa   : > { %1028 = dma.hbm_to_vmem [thread:$0]  (!%p1026_p5), %s147_s18, 18432, %s149_s21, [#allocation4], %s1091_s22, %s1091_s22, %s1092_s23  }
   0xb   : > { %1083 = dma.done.wait (%p1029_p2), [#allocation4], 18432  }
   0xc   : > { %1085 = vsyncadd (%p1029_p2), [#allocation4], 4294948864  ;;  %v376_v0 = vld [vmem:[#allocation3 + $0x178] sm:$0xff]  ;;  %v375_v1 = vld [vmem:[#allocation3 + $0x170] sm:$0xff]  ;;  %p205_p6 = scmp.lt.s32.totalorder %s1127_s19, 1  ;;  %vm249_vm0 = vcmask 1046528  }
   0xd   : > { %v295_v2 = vld [vmem:[#allocation3 + $0xf8] sm:$0xff]  ;;  %377 = vmatpush.msra.mxu2 %v376_v0  ;;  %v294_v4 = vld [vmem:[#allocation3 + $0xf0] sm:$0xff]  ;;  %v374_v5 = vld [vmem:[#allocation3 + $0x168] sm:$0xff]  ;;  %vm234_vm1 = vcmask 1040384   ;;  %vm883_vm2 = vcmask 195584   ;;  %vm888_vm3 = vcmask 188416  }
   0xe   : > { %296 = vmatpush.msra.mxu0 %v295_v2  ;;  %v278_v3 = vld [vmem:[#allocation3 + $0x78] sm:$0xff]  ;;  %v277_v6 = vld [vmem:[#allocation3 + $0x70] sm:$0xff]  ;;  %v293_v7 = vld [vmem:[#allocation3 + $0xe8] sm:$0xff]  ;;  %s1348_s19 = smov (!%p205_p6, %s1127_s19), 1 }
   0xf   : > { %328 = vmatpush.msra.mxu1 %v278_v3  ;;  %378 = vmatpush.msra.mxu2 %v375_v1  ;;  %v276_v8 = vld [vmem:[#allocation3 + $0x68] sm:$0xff]  ;;  %v373_v9 = vld [vmem:[#allocation3 + $0x160] sm:$0xff]  ;;  %v372_v12 = vld [vmem:[#allocation3 + $0x158] sm:$0xff]  ;;  %s1020_s24 = smul.u32 40, %s1348_s19 }
  0x10   : > { %297 = vmatpush.msra.mxu0 %v294_v4  ;;  %v292_v10 = vld [vmem:[#allocation3 + $0xe0] sm:$0xff]  ;;  %v291_v13 = vld [vmem:[#allocation3 + $0xd8] sm:$0xff]  ;;  %v371_v15 = vld [vmem:[#allocation3 + $0x150] sm:$0xff] }
  0x11   : > { %329 = vmatpush.msra.mxu1 %v277_v6  ;;  %379 = vmatpush.msra.mxu2 %v374_v5  ;;  %v275_v11 = vld [vmem:[#allocation3 + $0x60] sm:$0xff]  ;;  %v274_v14 = vld [vmem:[#allocation3 + $0x58] sm:$0xff]  ;;  %v290_v16 = vld [vmem:[#allocation3 + $0xd0] sm:$0xff]  ;;  %s1142_s27 = scalar_lea.vmem %s1342_s0, %s1020_s24  ;;  %s1328_s17 = scalar_lea.vmem %s1346_s4, %s1020_s24 }
  0x12   : > { %298 = vmatpush.msra.mxu0 %v293_v7  ;;  %v273_v17 = vld [vmem:[#allocation3 + $0x50] sm:$0xff]  ;;  %v370_v18 = vld [vmem:[#allocation3 + $0x148] sm:$0xff]  ;;  %v369_v21 = vld [vmem:[#allocation3 + $0x140] sm:$0xff] }
  0x13   : > { %330 = vmatpush.msra.mxu1 %v276_v8  ;;  %380 = vmatpush.msra.mxu2 %v373_v9  ;;  %v289_v19 = vld [vmem:[#allocation3 + $0xc8] sm:$0xff]  ;;  %v288_v22 = vld [vmem:[#allocation3 + $0xc0] sm:$0xff]  ;;  %v368_v24 = vld [vmem:[#allocation3 + $0x138] sm:$0xff] }
  0x14   : > { %299 = vmatpush.msra.mxu0 %v292_v10  ;;  %v272_v20 = vld [vmem:[#allocation3 + $0x48] sm:$0xff]  ;;  %v271_v23 = vld [vmem:[#allocation3 + $0x40] sm:$0xff]  ;;  %v287_v25 = vld [vmem:[#allocation3 + $0xb8] sm:$0xff] }
  0x15   : > { %331 = vmatpush.msra.mxu1 %v275_v11  ;;  %381 = vmatpush.msra.mxu2 %v372_v12  ;;  %v270_v26 = vld [vmem:[#allocation3 + $0x38] sm:$0xff]  ;;  %v367_v27 = vld [vmem:[#allocation3 + $0x130] sm:$0xff]  ;;  %v366_v29 = vld [vmem:[#allocation3 + $0x128] sm:$0xff] }
  0x16   : > { %300 = vmatpush.msra.mxu0 %v291_v13  ;;  %v286_v28 = vld [vmem:[#allocation3 + $0xb0] sm:$0xff]  ;;  %v365_v32 = vld [vmem:[#allocation3 + $0x120] sm:$0xff]  ;;  %v285_v33 = vld [vmem:[#allocation3 + $0xa8] sm:$0xff] }
  0x17   : > { %332 = vmatpush.msra.mxu1 %v274_v14  ;;  %382 = vmatpush.msra.mxu2 %v371_v15  ;;  %v269_v30 = vld [vmem:[#allocation3 + $0x30] sm:$0xff]  ;;  %v268_v34 = vld [vmem:[#allocation3 + $0x28] sm:$0xff]  ;;  %v284_v35 = vld [vmem:[#allocation3 + $0xa0] sm:$0xff] }
  0x18   : > { %301 = vmatpush.msra.mxu0 %v290_v16  ;;  %v219_v31 = vld [vmem:[%s1142_s27 + $0x20] sm:$0x1]  ;;  %v364_v36 = vld [vmem:[#allocation3 + $0x118] sm:$0xff]  ;;  %v267_v37 = vld [vmem:[#allocation3 + $0x20] sm:$0xff] }
  0x19   : > { %333 = vmatpush.msra.mxu1 %v273_v17  ;;  %383 = vmatpush.msra.mxu2 %v370_v18  ;;  %224 = vst [vmem:[#allocation2 + $0x18] sm:$0x1] %v219_v31  ;;  %v283_v38 = vld [vmem:[#allocation3 + $0x98] sm:$0xff]  ;;  %v1146_v39 = vld [vmem:[%s1142_s27] sm:$0xff]  ;;  %v362_v47 = vld [vmem:[#allocation3 + $0x108] sm:$0xff] }
  0x1a   : > { %302 = vmatpush.msra.mxu0 %v289_v19  ;;  %v1149_v40 = vld [vmem:[%s1142_s27 + $0x8] sm:$0xff]  ;;  %v363_v42 = vld [vmem:[#allocation3 + $0x110] sm:$0xff]  ;;  %v250_v45 = vrot.slane %v1146_v39, 1  ;;  %v281_v48 = vld [vmem:[#allocation3 + $0x88] sm:$0xff]  ;;  %v235_v49 = vrot.slane %v1146_v39, 7 }
  0x1b   : > { %334 = vmatpush.msra.mxu1 %v272_v20  ;;  %384 = vmatpush.msra.mxu2 %v369_v21  ;;  %v266_v41 = vld [vmem:[#allocation3 + $0x18] sm:$0xff]  ;;  %v282_v43 = vld [vmem:[#allocation3 + $0x90] sm:$0xff]  ;;  %v251_v46 = vrot.slane %v1149_v40, 1  ;;  %v264_v50 = vld [vmem:[#allocation3 + $0x8] sm:$0xff]  ;;  %v236_v61 = vrot.slane %v1149_v40, 7 }
  0x1c   : > { %303 = vmatpush.msra.mxu0 %v288_v22  ;;  %v265_v44 = vld [vmem:[#allocation3 + $0x10] sm:$0xff]  ;;  %v361_v51 = vld [vmem:[#allocation3 + $0x100] sm:$0xff]  ;;  %v247_v55 = vsel %vm234_vm1, %v1146_v39, %v235_v49  ;;  %v516_v58 = vld [vmem:[#allocation3 + $0x278] sm:$0xff] }
  0x1d   : > { %335 = vmatpush.msra.mxu1 %v271_v23  ;;  %385 = vmatpush.msra.mxu2 %v368_v24  ;;  %v280_v52 = vld [vmem:[#allocation3 + $0x80] sm:$0xff]  ;;  %v252_v53 = vsel %vm249_vm0, %v250_v45, %v251_v46  ;;  %v499_v59 = vld [vmem:[#allocation3 + $0x1f8] sm:$0xff]  ;;  %v515_v60 = vld [vmem:[#allocation3 + $0x270] sm:$0xff]  ;;  %v237_v6 = vsel %vm234_vm1, %v235_v49, %v236_v61 }
  0x1e   : > { %304 = vmatpush.msra.mxu0 %v287_v25  ;;  %v263_v54 = vld [vmem:[#allocation3] sm:$0xff]  ;;  %517 = vmatpush.msra.mxu3 %v516_v58  ;;  %v597_v62 = vld [vmem:[#allocation3 + $0x2f8] sm:$0xff]  ;;  %v498_v63 = vld [vmem:[#allocation3 + $0x1f0] sm:$0xff] }
  0x1f   : > { %336 = vmatpush.msra.mxu1 %v270_v26  ;;  %386 = vmatpush.msra.mxu2 %v367_v27  ;;  %v1158_v56 = vld [vmem:[%s1142_s27 + $0x10] sm:$0xff]  ;;  %v514_v0 = vld [vmem:[#allocation3 + $0x268] sm:$0xff]  ;;  %v596_v2 = vld [vmem:[#allocation3 + $0x2f0] sm:$0xff] }
  0x20   : > { %305 = vmatpush.msra.mxu0 %v286_v28  ;;  %v253_v57 = vrot.slane %v1158_v56, 1  ;;  %v497_v1 = vld [vmem:[#allocation3 + $0x1e8] sm:$0xff]  ;;  %518 = vmatpush.msra.mxu3 %v515_v60  ;;  %v513_v5 = vld [vmem:[#allocation3 + $0x260] sm:$0xff]  ;;  %v512_v8 = vld [vmem:[#allocation3 + $0x258] sm:$0xff]  ;;  %v238_v11 = vrot.slane %v1158_v56, 7 }
  0x21   : > { %337 = vmatpush.msra.mxu1 %v269_v30  ;;  %387 = vmatpush.msra.mxu2 %v366_v29  ;;  %v595_v3 = vld [vmem:[#allocation3 + $0x2e8] sm:$0xff]  ;;  %v496_v9 = vld [vmem:[#allocation3 + $0x1e0] sm:$0xff]  ;;  %v511_v19 = vld [vmem:[#allocation3 + $0x250] sm:$0xff] }
  0x22   : > { %306 = vmatpush.msra.mxu0 %v285_v33  ;;  %v254_v4 = vsel %vm249_vm0, %v251_v46, %v253_v57  ;;  %v1166_v7 = vld [vmem:[%s1142_s27 + $0x18] sm:$0xff]  ;;  %519 = vmatpush.msra.mxu3 %v514_v0  ;;  %v239_v13 = vsel %vm234_vm1, %v236_v61, %v238_v11  ;;  %v495_v20 = vld [vmem:[#allocation3 + $0x1d8] sm:$0xff]  ;;  %v494_v22 = vld [vmem:[#allocation3 + $0x1d0] sm:$0xff] }
  0x23   : > { %338 = vmatpush.msra.mxu1 %v268_v34  ;;  %388 = vmatpush.msra.mxu2 %v365_v32  ;;  %v255_v10 = vrot.slane %v1166_v7, 1  ;;  %v1173_v14 = vld [vmem:[#allocation2 + $0x18] sm:$0x1]  ;;  %v240_v16 = vrot.slane %v1166_v7, 7  ;;  %v509_v23 = vld [vmem:[#allocation3 + $0x240] sm:$0xff]  ;;  %v508_v25 = vld [vmem:[#allocation3 + $0x238] sm:$0xff] }
  0x24   : > { %307 = vmatpush.msra.mxu0 %v284_v35  ;;  %520 = vmatpush.msra.mxu3 %v513_v5  ;;  %v257_v15 = vrot.slane %v1173_v14, 1  ;;  %v510_v21 = vld [vmem:[#allocation3 + $0x248] sm:$0xff]  ;;  %v594_v26 = vld [vmem:[#allocation3 + $0x2e0] sm:$0xff]  ;;  %v507_v28 = vld [vmem:[#allocation3 + $0x230] sm:$0xff] }
  0x25   : > { %339 = vmatpush.msra.mxu1 %v267_v37  ;;  %389 = vmatpush.msra.mxu2 %v364_v36  ;;  %v256_v12 = vsel %vm249_vm0, %v253_v57, %v255_v10  ;;  %v241_v18 = vsel %vm234_vm1, %v238_v11, %v240_v16  ;;  %v493_v24 = vld [vmem:[#allocation3 + $0x1c8] sm:$0xff]  ;;  %v492_v27 = vld [vmem:[#allocation3 + $0x1c0] sm:$0xff]  ;;  %v593_v29 = vld [vmem:[#allocation3 + $0x2d8] sm:$0xff] }
  0x26   : > { %308 = vmatpush.msra.mxu0 %v283_v38  ;;  %521 = vmatpush.msra.mxu3 %v512_v8  ;;  %v258_v17 = vsel %vm249_vm0, %v255_v10, %v257_v15  ;;  %v491_v30 = vld [vmem:[#allocation3 + $0x1b8] sm:$0xff]  ;;  %v506_v31 = vld [vmem:[#allocation3 + $0x228] sm:$0xff]  ;;  %v592_v32 = vld [vmem:[#allocation3 + $0x2d0] sm:$0xff] }
  0x27   : > { %340 = vmatpush.msra.mxu1 %v266_v41  ;;  %390 = vmatpush.msra.mxu2 %v363_v42  ;;  %v490_v33 = vld [vmem:[#allocation3 + $0x1b0] sm:$0xff]  ;;  %v505_v34 = vld [vmem:[#allocation3 + $0x220] sm:$0xff]  ;;  %v591_v35 = vld [vmem:[#allocation3 + $0x2c8] sm:$0xff] }
  0x28   : > { %309 = vmatpush.msra.mxu0 %v282_v43  ;;  %522 = vmatpush.msra.mxu3 %v511_v19  ;;  %v489_v36 = vld [vmem:[#allocation3 + $0x1a8] sm:$0xff]  ;;  %v504_v37 = vld [vmem:[#allocation3 + $0x218] sm:$0xff]  ;;  %v590_v38 = vld [vmem:[#allocation3 + $0x2c0] sm:$0xff] }
  0x29   : > { %341 = vmatpush.msra.mxu1 %v265_v44  ;;  %391 = vmatpush.msra.mxu2 %v362_v47  ;;  %v488_v41 = vld [vmem:[#allocation3 + $0x1a0] sm:$0xff]  ;;  %v503_v42 = vld [vmem:[#allocation3 + $0x210] sm:$0xff]  ;;  %v589_v43 = vld [vmem:[#allocation3 + $0x2b8] sm:$0xff] }
  0x2a   : > { %310 = vmatpush.msra.mxu0 %v281_v48  ;;  %523 = vmatpush.msra.mxu3 %v510_v21  ;;  %v487_v44 = vld [vmem:[#allocation3 + $0x198] sm:$0xff]  ;;  %v502_v45 = vld [vmem:[#allocation3 + $0x208] sm:$0xff]  ;;  %v588_v46 = vld [vmem:[#allocation3 + $0x2b0] sm:$0xff] }
  0x2b   : > { %342 = vmatpush.msra.mxu1 %v264_v50  ;;  %392 = vmatpush.msra.mxu2 %v361_v51  ;;  %v486_v47 = vld [vmem:[#allocation3 + $0x190] sm:$0xff]  ;;  %v501_v48 = vld [vmem:[#allocation3 + $0x200] sm:$0xff]  ;;  %v587_v49 = vld [vmem:[#allocation3 + $0x2a8] sm:$0xff] }
  0x2c   : > { %311 = vmatpush.msra.mxu0 %v280_v52  ;;  %393 = vmatmul.f32.vlgmr.msra.gmra.mxu2 %v252_v53  ;;  %v485_v50 = vld [vmem:[#allocation3 + $0x188] sm:$0xff]  ;;  %v586_v51 = vld [vmem:[#allocation3 + $0x2a0] sm:$0xff]  ;;  %v585_v53 = vld [vmem:[#allocation3 + $0x298] sm:$0xff] }
  0x2d   : > { %343 = vmatpush.msra.mxu1 %v263_v54  ;;  %312 = vmatmul.f32.vlgmr.msra.gmra.mxu0 %v1146_v39  ;;  %v484_v52 = vld [vmem:[#allocation3 + $0x180] sm:$0xff]  ;;  %v584_v54 = vld [vmem:[#allocation3 + $0x290] sm:$0xff] }
  0x2e   : > { %344 = vmatmul.f32.vlgmr.msra.gmra.mxu1 %v247_v55  ;;  %549 = vmatpush.msrb.mxu0 %v499_v59  ;;  %v583_v55 = vld [vmem:[#allocation3 + $0x288] sm:$0xff]  ;;  %v582_v57 = vld [vmem:[#allocation3 + $0x280] sm:$0xff]  ;;  %v1186_v61 = vld [vmem:[%s1344_s2] ss:$0 sm:$0xff] }
  0x2f   : > { %598 = vmatpush.msrb.mxu1 %v597_v62  ;;  %524 = vmatpush.msra.mxu3 %v509_v23  ;;  %v1191_v0 = vld [vmem:[%s1345_s3] ss:$0 sm:$0xff] }
  0x30   : > { %550 = vmatpush.msrb.mxu0 %v498_v63 }
  0x31   : > { %599 = vmatpush.msrb.mxu1 %v596_v2  ;;  %525 = vmatpush.msra.mxu3 %v508_v25 }
  0x32   : > { %551 = vmatpush.msrb.mxu0 %v497_v1 }
  0x33   : > { %600 = vmatpush.msrb.mxu1 %v595_v3  ;;  %526 = vmatpush.msra.mxu3 %v507_v28 }
  0x34   : > { %396 = vmatmul.f32.gmra.mxu2 %v254_v4  ;;  %552 = vmatpush.msrb.mxu0 %v496_v9 }
  0x35   : > { %315 = vmatmul.f32.gmra.mxu0 %v1149_v40  ;;  %601 = vmatpush.msrb.mxu1 %v594_v26 }
  0x36   : > { %347 = vmatmul.f32.gmra.mxu1 %v237_v6  ;;  %553 = vmatpush.msrb.mxu0 %v495_v20 }
  0x37   : > { %602 = vmatpush.msrb.mxu1 %v593_v29  ;;  %527 = vmatpush.msra.mxu3 %v506_v31 }
  0x38   : > { %554 = vmatpush.msrb.mxu0 %v494_v22 }
  0x39   : > { %603 = vmatpush.msrb.mxu1 %v592_v32  ;;  %528 = vmatpush.msra.mxu3 %v505_v34 }
  0x3a   : > { %555 = vmatpush.msrb.mxu0 %v493_v24 }
  0x3b   : > { %604 = vmatpush.msrb.mxu1 %v591_v35  ;;  %529 = vmatpush.msra.mxu3 %v504_v37 }
  0x3c   : > { %399 = vmatmul.f32.gmra.mxu2 %v256_v12  ;;  %556 = vmatpush.msrb.mxu0 %v492_v27 }
  0x3d   : > { %318 = vmatmul.f32.gmra.mxu0 %v1158_v56  ;;  %605 = vmatpush.msrb.mxu1 %v590_v38 }
  0x3e   : > { %350 = vmatmul.f32.gmra.mxu1 %v239_v13  ;;  %557 = vmatpush.msrb.mxu0 %v491_v30 }
  0x3f   : > { %530 = vmatpush.msra.mxu3 %v503_v42  ;;  %606 = vmatpush.msrb.mxu1 %v589_v43 }
  0x40   : > { %558 = vmatpush.msrb.mxu0 %v490_v33 }
  0x41   : > { %531 = vmatpush.msra.mxu3 %v502_v45  ;;  %607 = vmatpush.msrb.mxu1 %v588_v46  ;;  %v738_v46 = vld [vmem:[#allocation3 + $0x3f0] sm:$0xff] }
  0x42   : > { %559 = vmatpush.msrb.mxu0 %v489_v36 }
  0x43   : > { %532 = vmatpush.msra.mxu3 %v501_v48  ;;  %608 = vmatpush.msrb.mxu1 %v587_v49  ;;  %v722_v48 = vld [vmem:[#allocation3 + $0x378] sm:$0xff] }
  0x44   : > { %402 = vmatmul.f32.gmra.mxu2 %v258_v17  ;;  %560 = vmatpush.msrb.mxu0 %v488_v41 }
  0x45   : > { %321 = vmatmul.f32.gmra.mxu0 %v1166_v7  ;;  %609 = vmatpush.msrb.mxu1 %v586_v51  ;;  %v721_v51 = vld [vmem:[#allocation3 + $0x370] sm:$0xff] }
  0x46   : > { %353 = vmatmul.f32.gmra.mxu1 %v241_v18  ;;  %561 = vmatpush.msrb.mxu0 %v487_v44 }
  0x47   : > { %610 = vmatpush.msrb.mxu1 %v585_v53  ;;  %772 = vmatpush.msrb.mxu3 %v722_v48 }
  0x48   : > { %562 = vmatpush.msrb.mxu0 %v486_v47 }
  0x49   : > { %611 = vmatpush.msrb.mxu1 %v584_v54  ;;  %v736_v54 = vld [vmem:[#allocation3 + $0x3e0] sm:$0xff]  ;;  %773 = vmatpush.msrb.mxu3 %v721_v51 }
  0x4a   : > { %563 = vmatpush.msrb.mxu0 %v485_v50  ;;  %v737_v50 = vld [vmem:[#allocation3 + $0x3e8] sm:$0xff] }
  0x4b   : > { %612 = vmatpush.msrb.mxu1 %v583_v55 }
  0x4c   : > { %405 = vmatmul.f32.gmra.mxu2 %v1173_v14  ;;  %564 = vmatpush.msrb.mxu0 %v484_v52 }
  0x4d   : > { %324 = vmatmul.f32.gmra.mxu0 %v1173_v14  ;;  %613 = vmatpush.msrb.mxu1 %v582_v57 }
  0x4e   : > { %356 = vmatmul.f32.gmra.mxu1 %v240_v16 }
  0xaa   : > { %v313_v58 = vpop.f32.mrf.mxu0 }
  0xab   : > { %v345_v59 = vpop.f32.mrf.mxu1 }
  0xac   : > { %v346_v60 = vadd.f32 %v345_v59, %v313_v58  ;;  %v735_v59 = vld [vmem:[#allocation3 + $0x3d8] sm:$0xff] }
  0xaf   : > { %v394_v62 = vpop.f32.mrf.mxu2 }
  0xb0   : > { %v409_v63 = vadd.f32 %v394_v62, %v346_v60 }
  0xb2   : > { %v418_v1 = vmul.f32 %v1186_v61, %v409_v63  ;;  %v316_v2 = vpop.f32.mrf.mxu0 }
  0xb3   : > { %v348_v3 = vpop.f32.mrf.mxu1 }
  0xb4   : > { %v427_v4 = vadd.f32 %v1191_v0, %v418_v1  ;;  %v349_v5 = vadd.f32 %v348_v3, %v316_v2  ;;  %v720_v3 = vld [vmem:[#allocation3 + $0x368] sm:$0xff] }
  0xb5   : > { %774 = vmatpush.msrb.mxu3 %v720_v3 }
  0xb6   : > { %v432_v6 = vmax.f32 %v427_v4, 0.0  ;;  %v719_v4 = vld [vmem:[#allocation3 + $0x360] sm:$0xff] }
  0xb7   : > { %v397_v8 = vpop.f32.mrf.mxu2  ;;  %775 = vmatpush.msrb.mxu3 %v719_v4 }
  0xb8   : > { %v1196_v9 = vadd.f32 %v432_v6, %v1146_v39  ;;  %v410_v10 = vadd.f32 %v397_v8, %v349_v5  ;;  %v734_v5 = vld [vmem:[#allocation3 + $0x3d0] sm:$0xff]  ;;  %v1242_v6 = vld [vmem:[#allocation3 + $0x478] sm:$0xff]  ;;  %v733_v8 = vld [vmem:[#allocation3 + $0x3c8] sm:$0xff] }
  0xb9   : > { %821 = vmatpush.msra.mxu0 %v1242_v6  ;;  %972 = vmatpush.msra.mxu1 %v1242_v6 }
  0xba   : > { %v419_v11 = vmul.f32 %v1186_v61, %v410_v10  ;;  %v319_v12 = vpop.f32.mrf.mxu0  ;;  %533 = vmatmul.f32.vlgmr.msra.gmra.mxu3 %v1196_v9  ;;  %v456_v15 = vrot.slane %v1196_v9, 7  ;;  %v470_v26 = vrot.slane %v1196_v9, 1  ;;  %v717_v10 = vld [vmem:[#allocation3 + $0x350] sm:$0xff] }
  0xbb   : > { %v351_v13 = vpop.f32.mrf.mxu1 }
  0xbc   : > { %v428_v16 = vadd.f32 %v1191_v0, %v419_v11  ;;  %v352_v17 = vadd.f32 %v351_v13, %v319_v12  ;;  %v468_v18 = vsel %vm234_vm1, %v1196_v9, %v456_v15  ;;  %v1245_v11 = vld [vmem:[#allocation3 + $0x470] sm:$0xff]  ;;  %v732_v12 = vld [vmem:[#allocation3 + $0x3c0] sm:$0xff]  ;;  %v716_v13 = vld [vmem:[#allocation3 + $0x348] sm:$0xff] }
  0xbd   : > { %565 = vmatmul.f32.vlgmr.msrb.gmra.mxu0 %v468_v18  ;;  %975 = vmatpush.msra.mxu1 %v1245_v11  ;;  %v1253_v18 = vld [vmem:[#allocation3 + $0x460] sm:$0xff] }
  0xbe   : > { %v433_v19 = vmax.f32 %v428_v16, 0.0  ;;  %822 = vmatpush.msra.mxu0 %v1245_v11  ;;  %v731_v16 = vld [vmem:[#allocation3 + $0x3b8] sm:$0xff] }
  0xbf   : > { %v400_v20 = vpop.f32.mrf.mxu2 }
  0xc0   : > { %v1205_v39 = vadd.f32 %v433_v19, %v1149_v40  ;;  %v411_v21 = vadd.f32 %v400_v20, %v352_v17  ;;  %v715_v17 = vld [vmem:[#allocation3 + $0x340] sm:$0xff]  ;;  %v730_v19 = vld [vmem:[#allocation3 + $0x3b0] sm:$0xff]  ;;  %v714_v20 = vld [vmem:[#allocation3 + $0x338] sm:$0xff] }
  0xc2   : > { %v420_v22 = vmul.f32 %v1186_v61, %v411_v21  ;;  %v322_v23 = vpop.f32.mrf.mxu0  ;;  %536 = vmatmul.f32.gmra.mxu3 %v1205_v39  ;;  %v457_v25 = vrot.slane %v1205_v39, 7  ;;  %v471_v27 = vrot.slane %v1205_v39, 1  ;;  %v1257_v21 = vld [vmem:[#allocation3 + $0x458] sm:$0xff] }
  0xc3   : > { %v354_v24 = vpop.f32.mrf.mxu1 }
  0xc4   : > { %v429_v28 = vadd.f32 %v1191_v0, %v420_v22  ;;  %v355_v29 = vadd.f32 %v354_v24, %v322_v23  ;;  %v458_v30 = vsel %vm234_vm1, %v456_v15, %v457_v25  ;;  %v472_v40 = vsel %vm249_vm0, %v470_v26, %v471_v27  ;;  %v1249_v15 = vld [vmem:[#allocation3 + $0x468] sm:$0xff]  ;;  %v713_v23 = vld [vmem:[#allocation3 + $0x330] sm:$0xff] }
  0xc5   : > { %568 = vmatmul.f32.gmra.mxu0 %v458_v30  ;;  %614 = vmatmul.f32.vlgmr.msrb.gmra.mxu1 %v472_v40  ;;  %v729_v22 = vld [vmem:[#allocation3 + $0x3a8] sm:$0xff]  ;;  %v1261_v24 = vld [vmem:[#allocation3 + $0x450] sm:$0xff]  ;;  %v813_v30 = vld [vmem:[#allocation3 + $0x440] sm:$0xff] }
  0xc6   : > { %v434_v31 = vmax.f32 %v429_v28, 0.0  ;;  %823 = vmatpush.msra.mxu0 %v1249_v15  ;;  %978 = vmatpush.msra.mxu1 %v1249_v15  ;;  %v712_v26 = vld [vmem:[#allocation3 + $0x328] sm:$0xff]  ;;  %v727_v28 = vld [vmem:[#allocation3 + $0x398] sm:$0xff]  ;;  %v726_v40 = vld [vmem:[#allocation3 + $0x390] sm:$0xff] }
  0xc7   : > { %v403_v32 = vpop.f32.mrf.mxu2 }
  0xc8   : > { %v1216_v33 = vadd.f32 %v434_v31, %v1158_v56  ;;  %v412_v34 = vadd.f32 %v403_v32, %v355_v29  ;;  %v739_v56 = vld [vmem:[#allocation3 + $0x3f8] sm:$0xff]  ;;  %824 = vmatpush.msra.mxu0 %v1253_v18  ;;  %981 = vmatpush.msra.mxu1 %v1253_v18  ;;  %v711_v29 = vld [vmem:[#allocation3 + $0x320] sm:$0xff] }
  0xc9   : > { %740 = vmatpush.msrb.mxu2 %v739_v56  ;;  %v710_v31 = vld [vmem:[#allocation3 + $0x318] sm:$0xff]  ;;  %v806_v56 = vld [vmem:[#allocation3 + $0x408] sm:$0xff] }
  0xca   : > { %v421_v35 = vmul.f32 %v1186_v61, %v412_v34  ;;  %v325_v36 = vpop.f32.mrf.mxu0  ;;  %539 = vmatmul.f32.gmra.mxu3 %v1216_v33  ;;  %v459_v38 = vrot.slane %v1216_v33, 7  ;;  %v473_v41 = vrot.slane %v1216_v33, 1  ;;  %825 = vmatpush.msra.mxu0 %v1257_v21  ;;  %v812_v32 = vld [vmem:[#allocation3 + $0x438] sm:$0xff]  ;;  %v725_v34 = vld [vmem:[#allocation3 + $0x388] sm:$0xff] }
  0xcb   : > { %v357_v37 = vpop.f32.mrf.mxu1  ;;  %741 = vmatpush.msrb.mxu2 %v738_v46  ;;  %984 = vmatpush.msra.mxu1 %v1257_v21  ;;  %v805_v46 = vld [vmem:[#allocation3 + $0x400] sm:$0xff] }
  0xcc   : > { %v430_v42 = vadd.f32 %v1191_v0, %v421_v35  ;;  %v358_v43 = vadd.f32 %v357_v37, %v325_v36  ;;  %v460_v44 = vsel %vm234_vm1, %v457_v25, %v459_v38  ;;  %v474_v45 = vsel %vm249_vm0, %v471_v27, %v473_v41  ;;  %v728_v25 = vld [vmem:[#allocation3 + $0x3a0] sm:$0xff]  ;;  %826 = vmatpush.msra.mxu0 %v1261_v24  ;;  %v1265_v27 = vld [vmem:[#allocation3 + $0x448] sm:$0xff]  ;;  %v709_v35 = vld [vmem:[#allocation3 + $0x310] sm:$0xff] }
  0xcd   : > { %571 = vmatmul.f32.gmra.mxu0 %v460_v44  ;;  %617 = vmatmul.f32.gmra.mxu1 %v474_v45  ;;  %v811_v36 = vld [vmem:[#allocation3 + $0x430] sm:$0xff]  ;;  %v724_v37 = vld [vmem:[#allocation3 + $0x380] sm:$0xff]  ;;  %v808_v44 = vld [vmem:[#allocation3 + $0x418] sm:$0xff] }
  0xce   : > { %v435_v47 = vmax.f32 %v430_v42, 0.0  ;;  %742 = vmatpush.msrb.mxu2 %v737_v50  ;;  %987 = vmatpush.msra.mxu1 %v1261_v24  ;;  %v707_v42 = vld [vmem:[#allocation3 + $0x300] sm:$0xff]  ;;  %v807_v45 = vld [vmem:[#allocation3 + $0x410] sm:$0xff] }
  0xcf   : > { %v406_v49 = vpop.f32.mrf.mxu2  ;;  %827 = vmatpush.msra.mxu0 %v1265_v27  ;;  %v1287_v50 = vld [vmem:[%s1344_s2 + $0x1] ss:$0 sm:$0xff] }
  0xd0   : > { %v1226_v52 = vadd.f32 %v435_v47, %v1166_v7  ;;  %v413_v53 = vadd.f32 %v406_v49, %v358_v43  ;;  %743 = vmatpush.msrb.mxu2 %v736_v54  ;;  %990 = vmatpush.msra.mxu1 %v1265_v27  ;;  %v809_v43 = vld [vmem:[#allocation3 + $0x420] sm:$0xff]  ;;  %v1292_v54 = vld [vmem:[%s1345_s3 + $0x1] ss:$0 sm:$0xff] }
  0xd1   : > { %828 = vmatpush.msra.mxu0 %v813_v30 }
  0xd2   : > { %v422_v55 = vmul.f32 %v1186_v61, %v413_v53  ;;  %542 = vmatmul.f32.gmra.mxu3 %v1226_v52  ;;  %v461_v57 = vrot.slane %v1226_v52, 7  ;;  %v475_v58 = vrot.slane %v1226_v52, 1  ;;  %744 = vmatpush.msrb.mxu2 %v735_v59 }
  0xd3   : > { %993 = vmatpush.msra.mxu1 %v813_v30  ;;  %829 = vmatpush.msra.mxu0 %v812_v32 }
  0xd4   : > { %v431_v60 = vadd.f32 %v1191_v0, %v422_v55  ;;  %v462_v62 = vsel %vm234_vm1, %v459_v38, %v461_v57  ;;  %v476_v7 = vsel %vm249_vm0, %v473_v41, %v475_v58  ;;  %745 = vmatpush.msrb.mxu2 %v734_v5  ;;  %v708_v38 = vld [vmem:[#allocation3 + $0x308] sm:$0xff] }
  0xd5   : > { %574 = vmatmul.f32.gmra.mxu0 %v462_v62  ;;  %620 = vmatmul.f32.gmra.mxu1 %v476_v7  ;;  %v810_v41 = vld [vmem:[#allocation3 + $0x428] sm:$0xff] }
  0xd6   : > { %v436_v63 = vmax.f32 %v431_v60, 0.0  ;;  %746 = vmatpush.msrb.mxu2 %v733_v8  ;;  %996 = vmatpush.msra.mxu1 %v812_v32 }
  0xd7   : > { %830 = vmatpush.msra.mxu0 %v811_v36 }
  0xd8   : > { %v441_v61 = vadd.f32 %v436_v63, %v1173_v14  ;;  %v718_v14 = vld [vmem:[#allocation3 + $0x358] sm:$0xff]  ;;  %747 = vmatpush.msrb.mxu2 %v732_v12  ;;  %999 = vmatpush.msra.mxu1 %v811_v36 }
  0xd9   : > { %776 = vmatpush.msrb.mxu3 %v718_v14  ;;  %831 = vmatpush.msra.mxu0 %v810_v41 }
  0xda   : > { %446 = vst [vmem:[#allocation2 + $0x18] sm:$0x1] %v441_v61  ;;  %748 = vmatpush.msrb.mxu2 %v731_v16  ;;  %1002 = vmatpush.msra.mxu1 %v810_v41 }
  0xdb   : > { %777 = vmatpush.msrb.mxu3 %v717_v10  ;;  %832 = vmatpush.msra.mxu0 %v809_v43 }
  0xdc   : > { %749 = vmatpush.msrb.mxu2 %v730_v19  ;;  %1005 = vmatpush.msra.mxu1 %v809_v43 }
  0xdd   : > { %577 = vmatmul.f32.gmra.mxu0 %v461_v57  ;;  %778 = vmatpush.msrb.mxu3 %v716_v13 }
  0xde   : > { %750 = vmatpush.msrb.mxu2 %v729_v22  ;;  %833 = vmatpush.msra.mxu0 %v808_v44 }
  0xdf   : > { %779 = vmatpush.msrb.mxu3 %v715_v17  ;;  %1008 = vmatpush.msra.mxu1 %v808_v44 }
  0xe0   : > { %751 = vmatpush.msrb.mxu2 %v728_v25  ;;  %834 = vmatpush.msra.mxu0 %v807_v45 }
  0xe1   : > { %v1236_v1 = vld [vmem:[#allocation2 + $0x18] sm:$0x1]  ;;  %780 = vmatpush.msrb.mxu3 %v714_v20  ;;  %1011 = vmatpush.msra.mxu1 %v807_v45 }
  0xe2   : > { %545 = vmatmul.f32.gmra.mxu3 %v1236_v1  ;;  %v477_v2 = vrot.slane %v1236_v1, 1  ;;  %752 = vmatpush.msrb.mxu2 %v727_v28 }
  0xe3   : > { %781 = vmatpush.msrb.mxu3 %v713_v23  ;;  %835 = vmatpush.msra.mxu0 %v806_v56 }
  0xe4   : > { %v478_v0 = vsel %vm249_vm0, %v475_v58, %v477_v2  ;;  %753 = vmatpush.msrb.mxu2 %v726_v40  ;;  %1014 = vmatpush.msra.mxu1 %v806_v56 }
  0xe5   : > { %623 = vmatmul.f32.gmra.mxu1 %v478_v0  ;;  %782 = vmatpush.msrb.mxu3 %v712_v26 }
  0xe6   : > { %754 = vmatpush.msrb.mxu2 %v725_v34  ;;  %836 = vmatpush.msra.mxu0 %v805_v46 }
  0xe7   : > { %783 = vmatpush.msrb.mxu3 %v711_v29  ;;  %1017 = vmatpush.msra.mxu1 %v805_v46 }
  0xe8   : > { %755 = vmatpush.msrb.mxu2 %v724_v37 }
  0xe9   : > { %784 = vmatpush.msrb.mxu3 %v710_v31 }
  0xea   : > { %973 = vmatpush.msra.mxu2 %v1242_v6 }
  0xeb   : > { %785 = vmatpush.msrb.mxu3 %v709_v35 }
  0xec   : > { %976 = vmatpush.msra.mxu2 %v1245_v11 }
  0xed   : > { %626 = vmatmul.f32.gmra.mxu1 %v1236_v1  ;;  %786 = vmatpush.msrb.mxu3 %v708_v38 }
  0xee   : > { %979 = vmatpush.msra.mxu2 %v1249_v15 }
  0xef   : > { %787 = vmatpush.msrb.mxu3 %v707_v42 }
  0xf0   : > { %982 = vmatpush.msra.mxu2 %v1253_v18 }
  0xf1   : > { %974 = vmatpush.msra.mxu3 %v1242_v6 }
  0xf2   : > { %985 = vmatpush.msra.mxu2 %v1257_v21 }
  0xf3   : > { %977 = vmatpush.msra.mxu3 %v1245_v11 }
  0xf4   : > { %988 = vmatpush.msra.mxu2 %v1261_v24 }
  0xf5   : > { %980 = vmatpush.msra.mxu3 %v1249_v15 }
  0xf6   : > { %991 = vmatpush.msra.mxu2 %v1265_v27 }
  0xf7   : > { %983 = vmatpush.msra.mxu3 %v1253_v18 }
  0xf8   : > { %994 = vmatpush.msra.mxu2 %v813_v30 }
  0xf9   : > { %986 = vmatpush.msra.mxu3 %v1257_v21 }
  0xfa   : > { %997 = vmatpush.msra.mxu2 %v812_v32 }
  0xfb   : > { %989 = vmatpush.msra.mxu3 %v1261_v24 }
  0xfc   : > { %1000 = vmatpush.msra.mxu2 %v811_v36 }
  0xfd   : > { %992 = vmatpush.msra.mxu3 %v1265_v27 }
  0xfe   : > { %1003 = vmatpush.msra.mxu2 %v810_v41 }
  0xff   : > { %995 = vmatpush.msra.mxu3 %v813_v30 }
 0x100   : > { %1006 = vmatpush.msra.mxu2 %v809_v43 }
 0x101   : > { %998 = vmatpush.msra.mxu3 %v812_v32 }
 0x102   : > { %1009 = vmatpush.msra.mxu2 %v808_v44 }
 0x103   : > { %1001 = vmatpush.msra.mxu3 %v811_v36 }
 0x104   : > { %1012 = vmatpush.msra.mxu2 %v807_v45 }
 0x105   : > { %1004 = vmatpush.msra.mxu3 %v810_v41 }
 0x106   : > { %1015 = vmatpush.msra.mxu2 %v806_v56 }
 0x107   : > { %1007 = vmatpush.msra.mxu3 %v809_v43 }
 0x108   : > { %1018 = vmatpush.msra.mxu2 %v805_v46 }
 0x109   : > { %1010 = vmatpush.msra.mxu3 %v808_v44 }
 0x10b   : > { %1013 = vmatpush.msra.mxu3 %v807_v45 }
 0x10d   : > { %1016 = vmatpush.msra.mxu3 %v806_v56 }
 0x10f   : > { %1019 = vmatpush.msra.mxu3 %v805_v46 }
 0x13a   : > { %v566_v47 = vpop.f32.mrf.mxu0 }
 0x13d   : > { %v534_v48 = vpop.f32.mrf.mxu3 }
 0x13e   : > { %v567_v49 = vadd.f32 %v566_v47, %v534_v48 }
 0x142   : > { %v615_v51 = vpop.f32.mrf.mxu1  ;;  %v569_v58 = vpop.f32.mrf.mxu0 }
 0x143   : > { %v630_v53 = vadd.f32 %v615_v51, %v567_v49 }
 0x145   : > { %v640_v55 = vmul.f32 %v1287_v50, %v630_v53  ;;  %v537_v57 = vpop.f32.mrf.mxu3 }
 0x146   : > { %v570_v62 = vadd.f32 %v569_v58, %v537_v57 }
 0x147   : > { %v650_v59 = vadd.f32 %v1292_v54, %v640_v55  ;;  %v1047_v55 = vld [vmem:[%s1345_s3 + $0x2] ss:$0 sm:$0xff] }
 0x149   : > { %v655_v60 = vmax.f32 %v650_v59, 0.0 }
 0x14a   : > { %v618_v7 = vpop.f32.mrf.mxu1  ;;  %v572_v14 = vpop.f32.mrf.mxu0 }
 0x14b   : > { %v660_v63 = vadd.f32 %v655_v60, %v1196_v9  ;;  %v631_v61 = vadd.f32 %v618_v7, %v570_v62 }
 0x14d   : > { %v641_v2 = vmul.f32 %v1287_v50, %v631_v61  ;;  %756 = vmatmul.f32.vlgmr.msrb.gmra.mxu2 %v660_v63  ;;  %v679_v0 = vrot.slane %v660_v63, 7  ;;  %v540_v3 = vpop.f32.mrf.mxu3  ;;  %v693_v13 = vrot.slane %v660_v63, 1 }
 0x14e   : > { %v573_v8 = vadd.f32 %v572_v14, %v540_v3 }
 0x14f   : > { %v651_v4 = vadd.f32 %v1292_v54, %v641_v2  ;;  %v691_v5 = vsel %vm234_vm1, %v660_v63, %v679_v0 }
 0x150   : > { %788 = vmatmul.f32.vlgmr.msrb.gmra.mxu3 %v691_v5 }
 0x151   : > { %v656_v6 = vmax.f32 %v651_v4, 0.0 }
 0x152   : > { %v621_v10 = vpop.f32.mrf.mxu1  ;;  %v575_v23 = vpop.f32.mrf.mxu0 }
 0x153   : > { %v661_v9 = vadd.f32 %v656_v6, %v1205_v39  ;;  %v632_v11 = vadd.f32 %v621_v10, %v573_v8 }
 0x155   : > { %v642_v12 = vmul.f32 %v1287_v50, %v632_v11  ;;  %v680_v15 = vrot.slane %v661_v9, 7  ;;  %v694_v16 = vrot.slane %v661_v9, 1  ;;  %759 = vmatmul.f32.gmra.mxu2 %v661_v9  ;;  %v543_v24 = vpop.f32.mrf.mxu3 }
 0x156   : > { %v576_v27 = vadd.f32 %v575_v23, %v543_v24 }
 0x157   : > { %v652_v17 = vadd.f32 %v1292_v54, %v642_v12  ;;  %v681_v18 = vsel %vm234_vm1, %v679_v0, %v680_v15  ;;  %v695_v19 = vsel %vm249_vm0, %v693_v13, %v694_v16 }
 0x158   : > { %791 = vmatmul.f32.gmra.mxu3 %v681_v18  ;;  %837 = vmatmul.f32.vlgmr.msra.gmra.mxu0 %v695_v19 }
 0x159   : > { %v657_v20 = vmax.f32 %v652_v17, 0.0 }
 0x15b   : > { %v662_v21 = vadd.f32 %v657_v20, %v1216_v33  ;;  %v578_v33 = vpop.f32.mrf.mxu0 }
 0x15d   : > { %v682_v22 = vrot.slane %v662_v21, 7  ;;  %v696_v39 = vrot.slane %v662_v21, 1  ;;  %762 = vmatmul.f32.gmra.mxu2 %v662_v21 }
 0x15f   : > { %v683_v25 = vsel %vm234_vm1, %v680_v15, %v682_v22  ;;  %v697_v26 = vsel %vm249_vm0, %v694_v16, %v696_v39 }
 0x160   : > { %794 = vmatmul.f32.gmra.mxu3 %v683_v25  ;;  %840 = vmatmul.f32.vlgmr.msra.gmra.mxu1 %v697_v26 }
 0x162   : > { %v624_v28 = vpop.f32.mrf.mxu1 }
 0x163   : > { %v633_v29 = vadd.f32 %v624_v28, %v576_v27 }
 0x165   : > { %v643_v30 = vmul.f32 %v1287_v50, %v633_v29  ;;  %v546_v40 = vpop.f32.mrf.mxu3 }
 0x166   : > { %v579_v34 = vadd.f32 %v578_v33, %v546_v40 }
 0x167   : > { %v653_v31 = vadd.f32 %v1292_v54, %v643_v30 }
 0x169   : > { %v658_v32 = vmax.f32 %v653_v31, 0.0 }
 0x16a   : > { %v627_v35 = vpop.f32.mrf.mxu1 }
 0x16b   : > { %v663_v36 = vadd.f32 %v658_v32, %v1226_v52  ;;  %v634_v37 = vadd.f32 %v627_v35, %v579_v34 }
 0x16d   : > { %v644_v38 = vmul.f32 %v1287_v50, %v634_v37  ;;  %v684_v41 = vrot.slane %v663_v36, 7  ;;  %765 = vmatmul.f32.gmra.mxu2 %v663_v36  ;;  %v698_v46 = vrot.slane %v663_v36, 1 }
 0x16f   : > { %v654_v42 = vadd.f32 %v1292_v54, %v644_v38  ;;  %v685_v43 = vsel %vm234_vm1, %v682_v22, %v684_v41  ;;  %v699_v52 = vsel %vm249_vm0, %v696_v39, %v698_v46 }
 0x170   : > { %797 = vmatmul.f32.gmra.mxu3 %v685_v43 }
 0x171   : > { %v659_v44 = vmax.f32 %v654_v42, 0.0 }
 0x173   : > { %v664_v45 = vadd.f32 %v659_v44, %v1236_v1  ;;  %v1046_v1 = vld [vmem:[%s1344_s2 + $0x2] ss:$0 sm:$0xff] }
 0x175   : > { %669 = vst [vmem:[#allocation2 + $0x18] sm:$0x1] %v664_v45 }
 0x178   : > { %800 = vmatmul.f32.gmra.mxu3 %v684_v41 }
 0x17c   : > { %v674_v56 = vld [vmem:[#allocation2 + $0x18] sm:$0x1] }
 0x17d   : > { %768 = vmatmul.f32.gmra.mxu2 %v674_v56  ;;  %v700_v47 = vrot.slane %v674_v56, 1 }
 0x17f   : > { %v701_v48 = vsel %vm249_vm0, %v698_v46, %v700_v47 }
 0x180   : > { %849 = vmatmul.f32.vlgmr.msra.gmra.mxu3 %v674_v56 }
 0x185   : > { %843 = vmatmul.f32.vlgmr.msra.gmra.mxu2 %v699_v52 }
 0x18d   : > { %846 = vmatmul.f32.gmra.mxu2 %v701_v48 }
 0x1d0   : > { %v757_v49 = vpop.f32.mrf.mxu2 }
 0x1d3   : > { %v789_v50 = vpop.f32.mrf.mxu3 }
 0x1d4   : > { %v790_v51 = vadd.f32 %v789_v50, %v757_v49 }
 0x1d5   : > { %v838_v53 = vpop.f32.mrf.mxu0 }
 0x1d6   : > { %v853_v54 = vadd.f32 %v838_v53, %v790_v51 }
 0x1d8   : > { %v863_v57 = vmul.f32 %v1046_v1, %v853_v54  ;;  %v760_v59 = vpop.f32.mrf.mxu2 }
 0x1da   : > { %v873_v58 = vadd.f32 %v1047_v55, %v863_v57 }
 0x1db   : > { %v792_v60 = vpop.f32.mrf.mxu3 }
 0x1dc   : > { %v878_v62 = vmax.f32 %v873_v58, 0.0  ;;  %v793_v7 = vadd.f32 %v792_v60, %v760_v59 }
 0x1dd   : > { %v841_v63 = vpop.f32.mrf.mxu1 }
 0x1de   : > { %884 = vst.msk [vmem:[%s1328_s17] sm:$0xff] %vm883_vm2, %v878_v62  ;;  %v854_v61 = vadd.f32 %v841_v63, %v793_v7 }
 0x1e0   : > { %v864_v2 = vmul.f32 %v1046_v1, %v854_v61  ;;  %v763_v5 = vpop.f32.mrf.mxu2 }
 0x1e2   : > { %v874_v0 = vadd.f32 %v1047_v55, %v864_v2 }
 0x1e3   : > { %v795_v4 = vpop.f32.mrf.mxu3 }
 0x1e4   : > { %v879_v3 = vmax.f32 %v874_v0, 0.0  ;;  %v796_v15 = vadd.f32 %v795_v4, %v763_v5 }
 0x1e6   : > { %885 = vst.msk [vmem:[%s1328_s17 + $0x8] sm:$0xff] %vm883_vm2, %v879_v3 }
 0x1f0   : > { %v766_v6 = vpop.f32.mrf.mxu2 }
 0x1f3   : > { %v798_v14 = vpop.f32.mrf.mxu3 }
 0x1f4   : > { %v799_v22 = vadd.f32 %v798_v14, %v766_v6 }
 0x1fb   : > { %v801_v8 = vpop.f32.mrf.mxu3 }
 0x200   : > { %v769_v10 = vpop.f32.mrf.mxu2 }
 0x201   : > { %v802_v9 = vadd.f32 %v801_v8, %v769_v10 }
 0x203   : > { %v850_v11 = vpop.f32.mrf.mxu3 }
 0x204   : > { %v857_v12 = vadd.f32 %v850_v11, %v802_v9 }
 0x206   : > { %v867_v13 = vmul.f32 %v1046_v1, %v857_v12 }
 0x208   : > { %v844_v16 = vpop.f32.mrf.mxu2  ;;  %v877_v17 = vadd.f32 %v1047_v55, %v867_v13 }
 0x209   : > { %v855_v18 = vadd.f32 %v844_v16, %v796_v15 }
 0x20a   : > { %v882_v19 = vmax.f32 %v877_v17, 0.0 }
 0x20b   : > { %v865_v20 = vmul.f32 %v1046_v1, %v855_v18 }
 0x20c   : > { %889 = vst.msk [vmem:[%s1328_s17 + $0x20] sm:$0x1] %vm888_vm3, %v882_v19 }
 0x20d   : > { %v875_v21 = vadd.f32 %v1047_v55, %v865_v20 }
 0x20f   : > { %v880_v39 = vmax.f32 %v875_v21, 0.0 }
 0x210   : > { %v847_v23 = vpop.f32.mrf.mxu2 }
 0x211   : > { %886 = vst.msk [vmem:[%s1328_s17 + $0x10] sm:$0xff] %vm883_vm2, %v880_v39  ;;  %v856_v24 = vadd.f32 %v847_v23, %v799_v22 }
 0x213   : > { %v866_v25 = vmul.f32 %v1046_v1, %v856_v24 }
 0x215   : > { %v876_v26 = vadd.f32 %v1047_v55, %v866_v25 }
 0x217   : > { %v881_v27 = vmax.f32 %v876_v26, 0.0 }
 0x219   : > { %887 = vst.msk [vmem:[%s1328_s17 + $0x18] sm:$0xff] %vm883_vm2, %v881_v27 }
 0x21a PF: > { %s15_s15 = sadd.s32 1, %s1088_s15  }
 0x21b   : > { %p12_p7 = scmp.ge.s32.totalorder %s15_s15, 4  }
 0x21d   :  { %14 = sbr.rel (!%p12_p7) target bundleno = 1 (0x1), region = 83 }
 0x222   :  { %911 = vsyncpa [#allocation4], 1 }
 0x223   :  { %913 = vsyncpa [#allocation4 + $0x1], 1 }

</bundles_post_ra>
